<compile_context>
chip_gen: v7x
topology: tpu7x:2x2x1
jax: 0.10.0
libtpu: 0.0.40
codegen_flags: <defaults>
</compile_context>

<pallas_src>
import math
import functools

import numpy as np
import jax
import jax.numpy as jnp
from jax.experimental import pallas as pl
from jax.experimental.pallas import tpu as pltpu

_LANE = 128
_SUBLANE = 8
_MAX_TILE_ROWS = 2048   # 2048 rows * 128 lanes * 4 B = 1 MiB per f32 input tile


def _row_plan(d):
    """Tiling plan for a flattened per-sample length d -> rows of 128 lanes."""
    rows = -(-d // _LANE)                              # ceil(d / 128)
    k = max(1, -(-rows // _MAX_TILE_ROWS))             # number of row tiles
    tile_rows = -(-rows // k)                          # balanced tile size
    tile_rows = -(-tile_rows // _SUBLANE) * _SUBLANE   # multiple of 8 sublanes
    rows_padded = k * tile_rows
    return k, tile_rows, rows_padded


def _to_slab(flat, pad_value, rows_padded):
    """(N, D) native dtype -> (N, rows_padded, 128), padded with neutral value."""
    n, d = flat.shape
    d_pad = rows_padded * _LANE
    if d_pad != d:
        flat = jnp.pad(flat, ((0, 0), (0, d_pad - d)), constant_values=pad_value)
    return flat.reshape(n, rows_padded, _LANE)


def _rd_kernel(x_ref, t_ref, l_ref, out_ref, sq_acc, log_acc, *,
               k_x, k_l, num_tiles, inv_d, inv_bpp):
    """One sample (grid axis 0), one row-tile (grid axis 1) per invocation."""
    t = pl.program_id(1)

    @pl.when(t == 0)
    def _init():
        sq_acc[...] = jnp.zeros_like(sq_acc)
        log_acc[...] = jnp.zeros_like(log_acc)

    def _distortion():
        diff = x_ref[...].astype(jnp.float32) - t_ref[...].astype(jnp.float32)
        sq = diff * diff
        # Lane-parallel partial sum (chunked accumulation keeps f32 error small).
        sq_acc[...] += jnp.sum(sq, axis=0, keepdims=True)

    def _rate():
        lg = jnp.log(l_ref[...].astype(jnp.float32))
        log_acc[...] += jnp.sum(lg, axis=0, keepdims=True)

    # Skip the branch entirely (statically) when the stream covers every tile.
    if k_x == num_tiles:
        _distortion()
    else:
        pl.when(t < k_x)(_distortion)

    if k_l == num_tiles:
        _rate()
    else:
        pl.when(t < k_l)(_rate)

    @pl.when(t == num_tiles - 1)
    def _finalize():
        mse = jnp.sum(sq_acc[...]) * inv_d
        bpp = jnp.sum(log_acc[...]) * inv_bpp
        # Lane-dense (8,128) output block: row 0 = bpp, row 1 = mse (broadcast).
        row = jax.lax.broadcasted_iota(jnp.int32, (_SUBLANE, _LANE), 0)
        out_ref[...] = jnp.where(row == 0, bpp, jnp.where(row == 1, mse, 0.0))


def rate_distortion_loss(output, target):
    """Pallas implementation of RateDistortionLoss.forward.

    output: dict with 'x_hat' (N,C,H,W), 'likelihoods' {name: (N,Ci,Hi,Wi)},
            'lmb' (N,)
    target: (N,C,H,W)
    """
    N, C, H, W = target.shape
    num_pixels = N * H * W
    d_img = C * H * W

    x_hat = output['x_hat']
    lmb = output['lmb']
    liks = list(output['likelihoods'].values())

    # ---- distortion stream: sublane/lane-dense slabs, native dtype (no casts) ---
    k_x, tr_x, rp_x = _row_plan(d_img)
    x_slab = _to_slab(x_hat.reshape(N, d_img), 0, rp_x)      # pad 0 -> diff = 0
    t_slab = _to_slab(target.reshape(N, d_img), 0, rp_x)

    # ---- rate stream: concat all likelihood tensors, pad with ones (log 1 = 0) --
    lik_flat = jnp.concatenate([v.reshape(N, -1) for v in liks], axis=-1)
    k_l, tr_l, rp_l = _row_plan(lik_flat.shape[-1])
    l_slab = _to_slab(lik_flat, 1, rp_l)

    num_tiles = max(k_x, k_l)

    kernel = functools.partial(
        _rd_kernel,
        k_x=k_x, k_l=k_l, num_tiles=num_tiles,
        inv_d=1.0 / float(d_img),
        inv_bpp=1.0 / (-math.log(2.0) * float(num_pixels)))

    def _index_map(k):
        if k == num_tiles:
            return lambda b, t: (b, t, 0)
        last = k - 1  # clamp: re-visited block => Pallas skips the redundant DMA
        return lambda b, t: (b, jnp.minimum(t, last), 0)

    stats = pl.pallas_call(
        kernel,
        out_shape=jax.ShapeDtypeStruct((N, _SUBLANE, _LANE), jnp.float32),
        grid_spec=pltpu.PrefetchScalarGridSpec(
            num_scalar_prefetch=0,
            grid=(N, num_tiles),
            in_specs=[
                pl.BlockSpec((None, tr_x, _LANE), _index_map(k_x)),   # x_hat
                pl.BlockSpec((None, tr_x, _LANE), _index_map(k_x)),   # target
                pl.BlockSpec((None, tr_l, _LANE), _index_map(k_l)),   # likelihoods
            ],
            out_specs=pl.BlockSpec((None, _SUBLANE, _LANE), lambda b, t: (b, 0, 0)),
            scratch_shapes=[
                pltpu.VMEM((1, _LANE), jnp.float32),   # per-lane partial sq sums
                pltpu.VMEM((1, _LANE), jnp.float32),   # per-lane partial log sums
            ]),
        compiler_params=pltpu.CompilerParams(
            # batch axis -> second TensorCore on v7x; row-tile axis is a reduction.
            dimension_semantics=("parallel", "arbitrary"),
            # Tiles are sized to ~6 MiB total; 32 MiB just lifts v5e's 16 MiB default.
            vmem_limit_bytes=32 * 1024 * 1024),
    )(x_slab, t_slab, l_slab)

    bpp = stats[:, 0, 0]
    mse = stats[:, 1, 0]
    # Final scalar mean over N lambda-weighted per-sample losses: trivial N-element
    # jnp op kept in the wrapper so the batch grid axis can remain 'parallel'.
    loss = jnp.mean(lmb.astype(jnp.float32) * mse + bpp)
    return {'bpp_loss': bpp, 'mse_loss': mse, 'loss': loss}


def rate_distortion_loss_ref(output, target):
    """Pure-JAX reference mirroring the PyTorch module."""
    N, _, H, W = target.shape
    num_pixels = N * H * W
    bpp = sum(
        jnp.sum(jnp.log(v), axis=(1, 2, 3)) / (-math.log(2) * num_pixels)
        for v in output['likelihoods'].values())
    mse = jnp.mean((output['x_hat'] - target) ** 2, axis=(1, 2, 3))
    loss = jnp.mean(output['lmb'] * mse + bpp)
    return {'bpp_loss': bpp, 'mse_loss': mse, 'loss': loss}


if __name__ == "__main__":
    key = jax.random.PRNGKey(0)
    k1, k2, k3, k4, k5 = jax.random.split(key, 5)

    N, C, H, W = 2, 4, 16, 16   # NCHW, small shapes

    target = jax.random.normal(k1, (N, C, H, W), jnp.float32)
    x_hat = target + 0.1 * jax.random.normal(k2, (N, C, H, W), jnp.float32)

    # Two likelihood tensors ('y' latent, 'z' hyper-latent), strictly positive.
    lik_y = jax.random.uniform(k3, (N, 8, H // 4, W // 4), jnp.float32, 0.05, 1.0)
    lik_z = jax.random.uniform(k4, (N, 4, H // 8, W // 8), jnp.float32, 0.05, 1.0)

    # Deterministic per-sample lambdas drawn from the module's lmbdas list.
    lmbdas = jnp.array([435.6675, 845.325, 1625.625, 3140.7075], jnp.float32)
    idx = jax.random.randint(k5, (N,), 0, lmbdas.shape[0])
    lmb = lmbdas[idx]

    output = {
        'x_hat': x_hat,
        'likelihoods': {'y': lik_y, 'z': lik_z},
        'lmb': lmb,
    }

    out = rate_distortion_loss(output, target)
    jax.block_until_ready(out['loss'])

    ref = rate_distortion_loss_ref(output, target)
    np.testing.assert_allclose(np.asarray(out['bpp_loss']),
                               np.asarray(ref['bpp_loss']), rtol=1e-5, atol=1e-5)
    np.testing.assert_allclose(np.asarray(out['mse_loss']),
                               np.asarray(ref['mse_loss']), rtol=1e-5, atol=1e-5)
    np.testing.assert_allclose(np.asarray(out['loss']),
                               np.asarray(ref['loss']), rtol=1e-5, atol=1e-5)

    print("KERNEL_OK")
</pallas_src>

<mosaic_0001>
module attributes {stable_mosaic.version = 11 : i64} {
  func.func @_rd_kernel(%arg0: i32, %arg1: i32, %arg2: memref<1x8x128xf32, #tpu.memory_space<vmem>>, %arg3: memref<1x8x128xf32, #tpu.memory_space<vmem>>, %arg4: memref<1x8x128xf32, #tpu.memory_space<vmem>>, %arg5: memref<1x8x128xf32, #tpu.memory_space<vmem>>, %arg6: memref<1x128xf32, #tpu.memory_space<vmem>>, %arg7: memref<1x128xf32, #tpu.memory_space<vmem>>) attributes {dimension_semantics = [#tpu.dimension_semantics<parallel>, #tpu.dimension_semantics<arbitrary>], iteration_bounds = array<i64: 2, 1>, scalar_prefetch = 0 : i64, scratch_operands = 2 : i64, tpu.core_type = #tpu.core_type<tc>, window_params = [{transform_indices = @transform_0, window_bounds = array<i64: 1, 8, 128>}, {transform_indices = @transform_1, window_bounds = array<i64: 1, 8, 128>}, {transform_indices = @transform_2, window_bounds = array<i64: 1, 8, 128>}, {transform_indices = @transform_3, window_bounds = array<i64: 1, 8, 128>}]} {
    %c0_i32 = arith.constant 0 : i32
    %0 = arith.cmpi eq, %arg1, %c0_i32 : i32
    %1 = arith.extui %0 : i1 to i32
    %c0_i32_0 = arith.constant 0 : i32
    %2 = arith.cmpi ne, %1, %c0_i32_0 : i32
    scf.if %2 {
      %cst_20 = arith.constant 0.000000e+00 : f32
      %25 = vector.broadcast %cst_20 : f32 to vector<1x128xf32>
      %c0_21 = arith.constant 0 : index
      %c0_22 = arith.constant 0 : index
      %26 = vector.load %arg6[%c0_21, %c0_22] : memref<1x128xf32, #tpu.memory_space<vmem>>, vector<1x128xf32>
      tpu.vector_store %arg6[%c0_21, %c0_22], %25 {strides = array<i32>} : memref<1x128xf32, #tpu.memory_space<vmem>>, vector<1x128xf32>,
      %cst_23 = arith.constant 0.000000e+00 : f32
      %27 = vector.broadcast %cst_23 : f32 to vector<1x128xf32>
      %c0_24 = arith.constant 0 : index
      %c0_25 = arith.constant 0 : index
      %28 = vector.load %arg7[%c0_24, %c0_25] : memref<1x128xf32, #tpu.memory_space<vmem>>, vector<1x128xf32>
      tpu.vector_store %arg7[%c0_24, %c0_25], %27 {strides = array<i32>} : memref<1x128xf32, #tpu.memory_space<vmem>>, vector<1x128xf32>,
    } else {
    }
    %c0 = arith.constant 0 : index
    %c0_1 = arith.constant 0 : index
    %c0_2 = arith.constant 0 : index
    %3 = vector.load %arg2[%c0, %c0_1, %c0_2] : memref<1x8x128xf32, #tpu.memory_space<vmem>>, vector<1x8x128xf32>
    %4 = vector.shape_cast %3 : vector<1x8x128xf32> to vector<8x128xf32>
    %c0_3 = arith.constant 0 : index
    %c0_4 = arith.constant 0 : index
    %c0_5 = arith.constant 0 : index
    %5 = vector.load %arg3[%c0_3, %c0_4, %c0_5] : memref<1x8x128xf32, #tpu.memory_space<vmem>>, vector<1x8x128xf32>
    %6 = vector.shape_cast %5 : vector<1x8x128xf32> to vector<8x128xf32>
    %7 = arith.subf %4, %6 : vector<8x128xf32>
    %8 = arith.mulf %7, %7 : vector<8x128xf32>
    %c0_6 = arith.constant 0 : index
    %c0_7 = arith.constant 0 : index
    %9 = vector.load %arg6[%c0_6, %c0_7] : memref<1x128xf32, #tpu.memory_space<vmem>>, vector<1x128xf32>
    %cst = arith.constant dense<0.000000e+00> : vector<128xf32>
    %10 = vector.multi_reduction <add>, %8, %cst [0] : vector<8x128xf32> to vector<128xf32>
    %11 = vector.shape_cast %10 : vector<128xf32> to vector<1x128xf32>
    %12 = arith.addf %9, %11 : vector<1x128xf32>
    %c0_8 = arith.constant 0 : index
    %c0_9 = arith.constant 0 : index
    %13 = vector.load %arg6[%c0_8, %c0_9] : memref<1x128xf32, #tpu.memory_space<vmem>>, vector<1x128xf32>
    tpu.vector_store %arg6[%c0_8, %c0_9], %12 {strides = array<i32>} : memref<1x128xf32, #tpu.memory_space<vmem>>, vector<1x128xf32>,
    %c0_10 = arith.constant 0 : index
    %c0_11 = arith.constant 0 : index
    %c0_12 = arith.constant 0 : index
    %14 = vector.load %arg4[%c0_10, %c0_11, %c0_12] : memref<1x8x128xf32, #tpu.memory_space<vmem>>, vector<1x8x128xf32>
    %15 = vector.shape_cast %14 : vector<1x8x128xf32> to vector<8x128xf32>
    %16 = math.log %15 : vector<8x128xf32>
    %c0_13 = arith.constant 0 : index
    %c0_14 = arith.constant 0 : index
    %17 = vector.load %arg7[%c0_13, %c0_14] : memref<1x128xf32, #tpu.memory_space<vmem>>, vector<1x128xf32>
    %cst_15 = arith.constant dense<0.000000e+00> : vector<128xf32>
    %18 = vector.multi_reduction <add>, %16, %cst_15 [0] : vector<8x128xf32> to vector<128xf32>
    %19 = vector.shape_cast %18 : vector<128xf32> to vector<1x128xf32>
    %20 = arith.addf %17, %19 : vector<1x128xf32>
    %c0_16 = arith.constant 0 : index
    %c0_17 = arith.constant 0 : index
    %21 = vector.load %arg7[%c0_16, %c0_17] : memref<1x128xf32, #tpu.memory_space<vmem>>, vector<1x128xf32>
    tpu.vector_store %arg7[%c0_16, %c0_17], %20 {strides = array<i32>} : memref<1x128xf32, #tpu.memory_space<vmem>>, vector<1x128xf32>,
    %c0_i32_18 = arith.constant 0 : i32
    %22 = arith.cmpi eq, %arg1, %c0_i32_18 : i32
    %23 = arith.extui %22 : i1 to i32
    %c0_i32_19 = arith.constant 0 : i32
    %24 = arith.cmpi ne, %23, %c0_i32_19 : i32
    scf.if %24 {
      %c0_20 = arith.constant 0 : index
      %c0_21 = arith.constant 0 : index
      %25 = vector.load %arg6[%c0_20, %c0_21] : memref<1x128xf32, #tpu.memory_space<vmem>>, vector<1x128xf32>
      %26 = vector.shape_cast %25 : vector<1x128xf32> to vector<1x1x128xf32>
      %cst_22 = arith.constant dense<0.000000e+00> : vector<1xf32>
      %27 = vector.multi_reduction <add>, %26, %cst_22 [1, 2] : vector<1x1x128xf32> to vector<1xf32>
      %28 = vector.shape_cast %27 : vector<1xf32> to vector<1x1x1xf32>
      %29 = vector.extract %28[0, 0, 0] : f32 from vector<1x1x1xf32>
      %cst_23 = arith.constant 9.765625E-4 : f32
      %30 = arith.mulf %29, %cst_23 : f32
      %c0_24 = arith.constant 0 : index
      %c0_25 = arith.constant 0 : index
      %31 = vector.load %arg7[%c0_24, %c0_25] : memref<1x128xf32, #tpu.memory_space<vmem>>, vector<1x128xf32>
      %32 = vector.shape_cast %31 : vector<1x128xf32> to vector<1x1x128xf32>
      %cst_26 = arith.constant dense<0.000000e+00> : vector<1xf32>
      %33 = vector.multi_reduction <add>, %32, %cst_26 [1, 2] : vector<1x1x128xf32> to vector<1xf32>
      %34 = vector.shape_cast %33 : vector<1xf32> to vector<1x1x1xf32>
      %35 = vector.extract %34[0, 0, 0] : f32 from vector<1x1x1xf32>
      %cst_27 = arith.constant -0.00281776371 : f32
      %36 = arith.mulf %35, %cst_27 : f32
      %37 = tpu.iota {dimensions = array<i32: 0>} : vector<8x128xi32>
      %c0_i32_28 = arith.constant 0 : i32
      %38 = vector.broadcast %c0_i32_28 : i32 to vector<8x128xi32>
      %39 = arith.cmpi eq, %37, %38 : vector<8x128xi32>
      %c1_i32 = arith.constant 1 : i32
      %40 = vector.broadcast %c1_i32 : i32 to vector<8x128xi32>
      %41 = arith.cmpi eq, %37, %40 : vector<8x128xi32>
      %cst_29 = arith.constant 0.000000e+00 : f32
      %42 = vector.broadcast %30 : f32 to vector<8x128xf32>
      %43 = vector.broadcast %cst_29 : f32 to vector<8x128xf32>
      %44 = arith.select %41, %42, %43 : vector<8x128xi1>, vector<8x128xf32>
      %45 = vector.broadcast %36 : f32 to vector<8x128xf32>
      %46 = arith.select %39, %45, %44 : vector<8x128xi1>, vector<8x128xf32>
      %c0_30 = arith.constant 0 : index
      %c0_31 = arith.constant 0 : index
      %c0_32 = arith.constant 0 : index
      %47 = vector.load %arg5[%c0_30, %c0_31, %c0_32] : memref<1x8x128xf32, #tpu.memory_space<vmem>>, vector<1x8x128xf32>
      %48 = vector.shape_cast %47 : vector<1x8x128xf32> to vector<8x128xf32>
      %49 = vector.shape_cast %46 : vector<8x128xf32> to vector<1x8x128xf32>
      tpu.vector_store %arg5[%c0_30, %c0_31, %c0_32], %49 {strides = array<i32>} : memref<1x8x128xf32, #tpu.memory_space<vmem>>, vector<1x8x128xf32>,
    } else {
    }
    return
  }
  func.func @transform_0(%arg0: i32, %arg1: i32) -> (i32, i32, i32) {
    %c0_i32 = arith.constant 0 : i32
    %c0_i32_0 = arith.constant 0 : i32
    return %arg0, %arg1, %c0_i32 : i32, i32, i32
  }
  func.func @transform_1(%arg0: i32, %arg1: i32) -> (i32, i32, i32) {
    %c0_i32 = arith.constant 0 : i32
    %c0_i32_0 = arith.constant 0 : i32
    return %arg0, %arg1, %c0_i32 : i32, i32, i32
  }
  func.func @transform_2(%arg0: i32, %arg1: i32) -> (i32, i32, i32) {
    %c0_i32 = arith.constant 0 : i32
    %c0_i32_0 = arith.constant 0 : i32
    return %arg0, %arg1, %c0_i32 : i32, i32, i32
  }
  func.func @transform_3(%arg0: i32, %arg1: i32) -> (i32, i32, i32) {
    %c0_i32 = arith.constant 0 : i32
    %c0_i32_0 = arith.constant 0 : i32
    %c0_i32_1 = arith.constant 0 : i32
    return %arg0, %c0_i32, %c0_i32_0 : i32, i32, i32
  }
}

</mosaic_0001>

<bundles_post_ra>
// kernel: tpu_custom_call.1
= control target key start
LH: loop header
LB: loop body
LE: loop exit
PB: predicated region body
PF: predicated region fallthrough
CT: control target
= control target key end

     0   :  { %s1049_s0 = inlined_call_operand.hbm [shape: f32[2,8,128], index: 0, kind: input, shape index: {}]   ;;  %s1050_s1 = inlined_call_operand.hbm [shape: f32[2,8,128], index: 1, kind: input, shape index: {}]   ;;  %s1051_s2 = inlined_call_operand.hbm [shape: f32[2,8,128], index: 2, kind: input, shape index: {}]   ;;  %s1052_s3 = inlined_call_operand.hbm [shape: f32[2,8,128], index: 3, kind: output, shape index: {}]  }
   0x1   :  { %1058 = sst [smem:[#allocation17_spill]] %s1050_s1 }
   0x2   :  { %8 = vsyncpa [#allocation5], 0 }
   0x3   :  { %10 = vsyncpa [#allocation5 + $0x1], 0 }
   0x4   :  { %11 = vsyncpa [#allocation8], 0 }
   0x5   :  { %13 = vsyncpa [#allocation8 + $0x1], 0 }
   0x6   :  { %14 = vsyncpa [#allocation6], 0 }
   0x7   :  { %16 = vsyncpa [#allocation6 + $0x1], 0  ;;  %s785_s12 = smov 0   ;;  %s787_s13 = smov 0  }
   0x8   :  { %s789_s14 = smov 0   ;;  %s791_s15 = smov 0  }
   0x9   :  { %s793_s16 = smov 0   ;;  %s795_s17 = smov 0  }
   0xa LB: > { %1059 = sst [smem:[#allocation14_spill]] %s754_s16  ;;  %s816_s18 = sadd.s32 4294967295, %s758_s17   ;;  %s758_s17 = sphi %s795_s17, %s22_s17   ;;  %s754_s16 = sphi %s793_s16, %s1080_s16   ;;  %s750_s15 = sphi %s791_s15, %s1079_s15   ;;  %s746_s14 = sphi %s789_s14, %s1083_s14   ;;  %s742_s13 = sphi %s787_s13, %s1082_s13   ;;  %s738_s12 = sphi %s785_s12, %s1081_s12  }
   0xb   : > { %s485_s19 = sadd.s32 4294967294, %s758_s17   ;;  %s34_s20 = sadd.s32 1, %s754_s16 }
   0xc   : > { %s43_s21 = sadd.s32 1, %s746_s14  ;;  %p36_p0 = scmp.ge.s32.totalorder %s34_s20, 2 }
   0xd   : > { %p50_p1 = scmp.ne.s32.totalorder %s746_s14, %s742_s13  ;;  %p51_p2 = scmp.eq.s32.totalorder %s758_s17, 0 }
   0xe   : > { %p56_p3 = scmp.ne.s32.totalorder %s742_s13, %s738_s12  ;;  %s1085_s20 = smov (%p36_p0, %s34_s20), 0 }
   0xf   : > { %1060 = sst [smem:[#allocation15_spill]] %s1085_s20  ;;  %p828_p4 = por %p51_p2, %p50_p1 }
  0x10   : > { %p57_p5 = scmp.eq.s32.totalorder %s816_s18, 0  ;;  %s38_s23 = ssub.s32 %s754_s16, %s1085_s20 }
  0x11   : > { %p136_p6 = scmp.eq.s32.totalorder %s816_s18, 1  ;;  %p41_p7 = scmp.eq.s32.totalorder %s38_s23, 0 }
  0x12   : > { %p836_p8 = por %p57_p5, %p56_p3  ;;  %p142_p10 = scmp.eq.s32.totalorder %s485_s19, 1 }
  0x13   : > { %p840_p9 = por %p136_p6, %p50_p1  ;;  %p529_p13 = scmp.lt.s32.totalorder %s758_s17, 2 }
  0x14   : > { %s1062_s24 = scalar_select %p836_p8, 1, 0 }
  0x15   : > { %s1063_s25 = scalar_select %p840_p9, 1, 0 }
  0x16   : > { %s845_s26 = scalar_select %p41_p7, %s746_s14, %s43_s21  }
  0x17   : > { %p847_p11 = por %p142_p10, %p56_p3  ;;  %s162_s28 = sand.u32 1, %s746_s14  }
  0x18   : > { %1064 = sst [smem:[#allocation16_spill]] %s845_s26  ;;  %s856_s29 = sshll.u32 %s162_s28, 3 }
  0x19   : > { %s1065_s27 = scalar_select %p847_p11, 1, 0 }
  0x1a   : > { %s859_s30 = sshll.u32 %s754_s16, 7  ;;  %p863_p0 = pnand %p529_p13, %p828_p4 }
  0x1b   : > { %s181_s5 = sand.u32 1, %s758_s17   ;;  %s1067_s1 = sld [smem:[#allocation17_spill]] }
  0x1c   : > { %s1066_s4 = scalar_select %p863_p0, 1, 0 }
  0x1d   : > { %s185_s9 = scalar_lea.vmem [#allocation7], %s856_s29  ;;  %s879_s11 = scalar_lea.sflag [#allocation8], %s181_s5 }
  0x1e   : > { %s193_s10 = sshll.u32 %s185_s9, 4  ;;  %p885_p4 = pneg %p863_p0  ;;  %s876_s10 = int_to_ptr.vmem [resolvable:$true] %s193_s10 }
  0x21   : > { %s872_s8 = scalar_lea.hbm %s1067_s1, %s859_s30  ;;  %s587_s6 = scalar_lea.hbm %s1067_s1, 256 }
  0x22   : > { %s582_s19 = scalar_lea.hbm %s872_s8, 128  ;;  %p588_p7 = scmp.lt.u32.totalorder %s872_s8, %s1067_s1 }
  0x23   : > { %p583_p3 = scmp.ne.s32.totalorder %s872_s8, %s582_s19  ;;  %p589_p10 = scmp.lt.u32.totalorder %s587_s6, %s582_s19 }
  0x24   : > { %p591_p12 = scmp.lt.u32.totalorder %s582_s19, %s872_s8 }
  0x25   : > { %p585_p5 = pnand %p885_p4, %p583_p3  ;;  %p590_p13 = por %p589_p10, %p588_p7 }
  0x27   : > { %p586_p6 = pneg %p585_p5  ;;  %p592_p1 = por %p591_p12, %p590_p13 }
  0x29   : > { %p593_p2 = pnand %p592_p1, %p586_p6 }
  0x2b   : > { %596 = shalt.err (!%p593_p2)
}
  0x2c   : > { %s597_s5 = scalar_lea.vmem %s876_s10, 128  ;;  %s760_s22 = smov [#allocation7]  }
  0x2d   : > { %p598_p3 = scmp.ne.s32.totalorder %s876_s10, %s597_s5  ;;  %s602_s23 = sshll.u32 %s760_s22, 4  ;;  %s603_s23 = int_to_ptr.vmem [resolvable:$false] %s602_s23 }
  0x2e   : > { %s604_s7 = scalar_lea.vmem %s603_s23, 256  ;;  %p605_p9 = scmp.lt.s32.totalorder %s876_s10, %s603_s23 }
  0x2f   : > { %p600_p5 = pnand %p598_p3, %p885_p4  ;;  %p606_p8 = scmp.lt.s32.totalorder %s604_s7, %s597_s5 }
  0x31   : > { %p601_p11 = pneg %p600_p5  ;;  %p607_p7 = por %p606_p8, %p605_p9 }
  0x33   : > { %p608_p10 = pnand %p607_p7, %p601_p11 }
  0x35   : > { %611 = shalt.err (!%p608_p10)
}
  0x36   : > { %521 = dma.hbm_to_vmem [thread:$0]  (!%p863_p0), %s872_s8, 128, %s876_s10, %s879_s11  }
  0x37   : > { %p1069_p12 = scmp.lt.s32.totalorder %s758_s17, 3  ;;  %p1070_p1 = scmp.ge.s32.totalorder %s758_s17, 1 }
  0x38   : > { %s921_s5 = scalar_lea.hbm %s1049_s0, %s859_s30  ;;  %s166_s22 = scalar_lea.vmem [#allocation4], %s856_s29 }
  0x39   : > { %p913_p2 = pnand %p1070_p1, %p1069_p12  ;;  %s174_s23 = sshll.u32 %s166_s22, 4  ;;  %s924_s23 = int_to_ptr.vmem [resolvable:$true] %s174_s23 }
  0x3a   : > { %s930_s7 = scalar_lea.hbm %s1051_s2, %s859_s30  ;;  %s163_s1 = scalar_lea.sflag [#allocation5], %s162_s28 }
  0x3b   : > { %s1071_s19 = scalar_select %p913_p2, 1, 0 }
  0x3c   : > { %s612_s20 = scalar_lea.hbm %s921_s5, 128  ;;  %s617_s16 = scalar_lea.hbm %s1049_s0, 256 }
  0x3d   : > { %p613_p8 = scmp.ne.s32.totalorder %s921_s5, %s612_s20  ;;  %p618_p6 = scmp.lt.u32.totalorder %s921_s5, %s1049_s0 }
  0x3e   : > { %p619_p13 = scmp.lt.u32.totalorder %s617_s16, %s612_s20  ;;  %p621_p5 = scmp.lt.u32.totalorder %s612_s20, %s921_s5 }
  0x3f   : > { %p615_p9 = pnand %p613_p8, %p885_p4 }
  0x40   : > { %p620_p3 = por %p619_p13, %p618_p6 }
  0x41   : > { %p616_p11 = pneg %p615_p9 }
  0x42   : > { %p622_p7 = por %p621_p5, %p620_p3 }
  0x44   : > { %p623_p10 = pnand %p622_p7, %p616_p11 }
  0x46   : > { %626 = shalt.err (!%p623_p10)
}
  0x47   : > { %s627_s28 = scalar_lea.vmem %s924_s23, 128  ;;  %s761_s30 = smov [#allocation4]  }
  0x48   : > { %p628_p12 = scmp.ne.s32.totalorder %s924_s23, %s627_s28  ;;  %s632_s8 = sshll.u32 %s761_s30, 4  ;;  %s633_s8 = int_to_ptr.vmem [resolvable:$false] %s632_s8 }
  0x49   : > { %s634_s26 = scalar_lea.vmem %s633_s8, 256  ;;  %p635_p9 = scmp.lt.s32.totalorder %s924_s23, %s633_s8 }
  0x4a   : > { %p630_p1 = pnand %p628_p12, %p885_p4  ;;  %p636_p2 = scmp.lt.s32.totalorder %s634_s26, %s627_s28 }
  0x4c   : > { %p631_p8 = pneg %p630_p1  ;;  %p637_p6 = por %p636_p2, %p635_p9 }
  0x4e   : > { %p638_p13 = pnand %p637_p6, %p631_p8 }
  0x50   : > { %641 = shalt.err (!%p638_p13)
}
  0x51   : > { %518 = dma.hbm_to_vmem [thread:$0]  (!%p863_p0), %s921_s5, 128, %s924_s23, %s163_s1  }
  0x52   : > { %s204_s16 = scalar_lea.vmem [#allocation9], %s856_s29  ;;  %s642_s10 = scalar_lea.hbm %s930_s7, 128 }
  0x53   : > { %s212_s20 = sshll.u32 %s204_s16, 4  ;;  %p643_p11 = scmp.ne.s32.totalorder %s930_s7, %s642_s10  ;;  %s213_s20 = int_to_ptr.vmem [resolvable:$true] %s212_s20 }
  0x54   : > { %s647_s22 = scalar_lea.hbm %s1051_s2, 256  ;;  %p648_p5 = scmp.lt.u32.totalorder %s930_s7, %s1051_s2 }
  0x55   : > { %p645_p2 = pnand %p643_p11, %p885_p4  ;;  %p649_p7 = scmp.lt.u32.totalorder %s647_s22, %s642_s10 }
  0x56   : > { %p651_p12 = scmp.lt.u32.totalorder %s642_s10, %s930_s7 }
  0x57   : > { %p646_p3 = pneg %p645_p2  ;;  %p650_p10 = por %p649_p7, %p648_p5 }
  0x59   : > { %p652_p1 = por %p651_p12, %p650_p10 }
  0x5b   : > { %p653_p8 = pnand %p652_p1, %p646_p3 }
  0x5d   : > { %656 = shalt.err (!%p653_p8)
}
  0x5e   : > { %s657_s1 = scalar_lea.vmem %s213_s20, 128  ;;  %s762_s29 = smov [#allocation9]  }
  0x5f   : > { %p658_p9 = scmp.ne.s32.totalorder %s213_s20, %s657_s1  ;;  %s662_s5 = sshll.u32 %s762_s29, 4  ;;  %s663_s5 = int_to_ptr.vmem [resolvable:$false] %s662_s5 }
  0x60   : > { %s664_s23 = scalar_lea.vmem %s663_s5, 256  ;;  %p665_p11 = scmp.lt.s32.totalorder %s213_s20, %s663_s5 }
  0x61   : > { %p660_p6 = pnand %p658_p9, %p885_p4  ;;  %p666_p2 = scmp.lt.s32.totalorder %s664_s23, %s657_s1 }
  0x63   : > { %p661_p13 = pneg %p660_p6  ;;  %p667_p0 = por %p666_p2, %p665_p11 }
  0x65   : > { %p668_p5 = pnand %p667_p0, %p661_p13 }
  0x67   : > { %671 = shalt.err (!%p668_p5)
}
  0x68   : > { %p1072_p7 = scmp.ne.s32.totalorder %s1066_s4, 0  ;;  %p1073_p3 = scmp.ne.s32.totalorder %s1071_s19, 0 }
  0x69   : > { %s977_s21 = sand.u32 (!%p1073_p3), 1, %s742_s13   ;;  %p1074_p0 = scmp.ne.s32.totalorder (!%p1073_p3), %s1062_s24, 0 }
  0x6a   : > { %524 = dma.hbm_to_vmem [thread:$0]  (!%p1072_p7), %s930_s7, 128, %s213_s20, %s879_s11  }
  0x6b   : > { %221 = sbr.rel (%p1073_p3) target bundleno = 378 (0x17a), region = 32  ;;  %s980_s8 = sshll.u32 (!%p1073_p3), %s977_s21, 3 }
  0x6c   : > { %s224_s26 = scalar_lea.sflag (!%p1073_p3), [#allocation5], %s977_s21  ;;  %s227_s16 = scalar_lea.vmem (!%p1073_p3), [#allocation4], %s980_s8 }
  0x72   : > { %725 = dma.done.wait (%p1074_p0), %s224_s26, 128  }
  0x73   : > { %727 = vsyncadd (%p1074_p0), %s224_s26, 4294967168  ;;  %s232_s4 = sand.u32 1, %s816_s18   ;;  %s236_s19 = scalar_lea.vmem [#allocation7], %s980_s8 }
  0x74   : > { %s233_s11 = scalar_lea.sflag [#allocation8], %s232_s4 }
  0x75   : > { %729 = dma.done.wait (%p1074_p0), %s233_s11, 256  }
  0x76   : > { %731 = vsyncadd (%p1074_p0), %s233_s11, 4294967040  ;;  %v763_v0 = vmov 0.0   ;;  %v284_v1 = vld [vmem:[%s227_s16] sm:$0xff]  ;;  %v285_v2 = vld [vmem:[%s236_s19] sm:$0xff]  ;;  %s245_s7 = scalar_lea.vmem [#allocation9], %s980_s8  ;;  %vm313_vm0 = vcmask 1040384   ;;  %v337_v42 = vlaneseq }
  0x77   : > { %282 = vst [vmem:[#allocation2] sm:$0x1] %v763_v0  ;;  %283 = vst [vmem:[#allocation3] sm:$0x1] %v763_v0  ;;  %v297_v3 = vld [vmem:[%s245_s7] sm:$0xff]  ;;  %v286_v4 = vsub.f32 %v284_v1, %v285_v2  ;;  %s500_s20 = sshll.u32 %s750_s15, 7 }
  0x78   : > { %580 = vlog2.f32 %v297_v3  ;;  %v338_v43 = vshrl.u32 %v337_v42, 7  ;;  %s277_s6 = scalar_lea.vmem [#allocation10], %s980_s8  ;;  %s1000_s1 = scalar_lea.hbm %s1052_s3, %s500_s20 }
  0x79   : > { %v287_v5 = vmul.f32 %v286_v4, %v286_v4  ;;  %s360_s9 = sshll.u32 %s277_s6, 4  ;;  %s347_s15 = scalar_lea.sflag [#allocation6], %s977_s21  ;;  %s1002_s9 = int_to_ptr.vmem [resolvable:$true] %s360_s9 }
  0x7a   : > { %vm340_vm1 = vcmp.eq.s32.totalorder %v338_v43, 1  ;;  %vm339_vm2 = vcmp.eq.s32.totalorder %v338_v43, 0  ;;  %s672_s29 = scalar_lea.vmem %s1002_s9, 128  ;;  %p1075_p10 = scmp.ne.s32.totalorder %s1063_s25, 0 }
  0x7b   : > { %v289_v6 = vrot.slane %v287_v5, 4  ;;  %p673_p4 = scmp.ne.s32.totalorder %s1002_s9, %s672_s29  ;;  %s764_s5 = smov [#allocation10]  }
  0x7c   : > { %s676_s23 = sshll.u32 %s764_s5, 4  ;;  %s677_s23 = int_to_ptr.vmem [resolvable:$false] %s676_s23 }
  0x7d   : > { %v290_v7 = vadd.f32 %v289_v6, %v287_v5  ;;  %p674_p12 = pnand %p673_p4, %p1075_p10  ;;  %s678_s8 = scalar_lea.vmem %s677_s23, 256 }
  0x7e   : > { %v288_v13 = vld [vmem:[#allocation2] sm:$0x1]  ;;  %v300_v21 = vld [vmem:[#allocation3] sm:$0x1]  ;;  %p679_p8 = scmp.lt.s32.totalorder %s1002_s9, %s677_s23  ;;  %p680_p9 = scmp.lt.s32.totalorder %s678_s8, %s672_s29 }
  0x7f   : > { %v291_v8 = vrot.slane %v290_v7, 2  ;;  %p675_p1 = pneg %p674_p12 }
  0x80   : > { %p681_p6 = por %p680_p9, %p679_p8 }
  0x81   : > { %v292_v10 = vadd.f32 %v291_v8, %v290_v7 }
  0x82   : > { %v581_v9 = vpop.eup %580  ;;  %p682_p13 = pnand %p681_p6, %p675_p1 }
  0x83   : > { %v299_v11 = vmul.f32 0.6931472, %v581_v9  ;;  %v293_v12 = vrot.slane %v292_v10, 1 }
  0x85   : > { %v301_v14 = vrot.slane %v299_v11, 4  ;;  %v294_v15 = vadd.f32 %v293_v12, %v292_v10 }
  0x87   : > { %v302_v16 = vadd.f32 %v301_v14, %v299_v11  ;;  %v295_v17 = vadd.f32 %v294_v15, %v288_v13 }
  0x89   : > { %v303_v18 = vrot.slane %v302_v16, 2  ;;  %296 = vst [vmem:[#allocation2] sm:$0x1] %v295_v17 }
  0x8b   : > { %v304_v19 = vadd.f32 %v303_v18, %v302_v16 }
  0x8d   : > { %v305_v20 = vrot.slane %v304_v19, 1 }
  0x8f   : > { %v306_v22 = vadd.f32 %v305_v20, %v304_v19 }
  0x90   : > { %v312_v23 = vld [vmem:[#allocation2] sm:$0x1] }
  0x91   : > { %v307_v24 = vadd.f32 %v306_v22, %v300_v21  ;;  %v314_v25 = vsel %vm313_vm0, %v312_v23, 0.0 }
  0x92   : > { %315 = vadd.xlane.f32.xlu0 %v314_v25 }
  0x93   : > { %308 = vst [vmem:[#allocation3] sm:$0x1] %v307_v24 }
  0x9a   : > { %v325_v26 = vld [vmem:[#allocation3] sm:$0x1] }
  0x9b   : > { %v326_v27 = vsel %vm313_vm0, %v325_v26, 0.0 }
  0x9c   : > { %327 = vadd.xlane.f32.xlu0 %v326_v27 }
 0x11f   : > { %v316_v28 = vpop.xlane.xlu0 %315 }
 0x120   : > { %v317_v29 = vrot.slane %v316_v28, 4 }
 0x122   : > { %v318_v30 = vadd.f32 %v317_v29, %v316_v28 }
 0x124   : > { %v319_v31 = vrot.slane %v318_v30, 2 }
 0x126   : > { %v320_v32 = vadd.f32 %v319_v31, %v318_v30 }
 0x128   : > { %v321_v34 = vrot.slane %v320_v32, 1 }
 0x129   : > { %v328_v33 = vpop.xlane.xlu0 %327 }
 0x12a   : > { %v329_v35 = vrot.slane %v328_v33, 4  ;;  %v322_v36 = vadd.f32 %v321_v34, %v320_v32 }
 0x12c   : > { %v330_v37 = vadd.f32 %v329_v35, %v328_v33  ;;  %503 = vpush %v322_v36 }
 0x12e   : > { %v331_v38 = vrot.slane %v330_v37, 2 }
 0x130   : > { %v332_v39 = vadd.f32 %v331_v38, %v330_v37 }
 0x132   : > { %v333_v40 = vrot.slane %v332_v39, 1 }
 0x134   : > { %v334_v41 = vadd.f32 %v333_v40, %v332_v39 }
 0x136   : > { %505 = vpush %v334_v41 }
 0x15d   : > { %s504_s18 = spop %503 }
 0x15e   : > { %s324_s24 = smul.f32 0.0009765625, %s504_s18 }
 0x160   : > { %v341_v44 = vstv %s324_s24 }
 0x161   : > { %v342_v45 = vsel %vm340_vm1, %v341_v44, 0.0 }
 0x167   : > { %s506_s10 = spop %505 }
 0x168   : > { %s336_s22 = smul.f32 -0.0028177637, %s506_s10 }
 0x16a   : > { %v343_v46 = vstv %s336_s22 }
 0x16b   : > { %v344_v47 = vsel %vm339_vm2, %v343_v46, %v342_v45 }
 0x16c   : > { %345 = vst [vmem:[%s277_s6] sm:$0xff] %v344_v47 }
 0x16d   : > { %685 = shalt.err (!%p682_p13)
}
 0x16e   : > { %s686_s21 = scalar_lea.hbm %s1000_s1, 128  ;;  %s690_s4 = scalar_lea.hbm %s1052_s3, 256 }
 0x16f   : > { %p687_p11 = scmp.ne.s32.totalorder %s1000_s1, %s686_s21  ;;  %p691_p7 = scmp.lt.u32.totalorder %s1000_s1, %s1052_s3 }
 0x170   : > { %p692_p3 = scmp.lt.u32.totalorder %s690_s4, %s686_s21  ;;  %p694_p4 = scmp.lt.u32.totalorder %s686_s21, %s1000_s1 }
 0x171   : > { %p688_p2 = pnand %p687_p11, %p1075_p10 }
 0x172   : > { %p693_p0 = por %p692_p3, %p691_p7 }
 0x173   : > { %p689_p5 = pneg %p688_p2 }
 0x174   : > { %p695_p12 = por %p694_p4, %p693_p0 }
 0x176   : > { %p696_p1 = pnand %p695_p12, %p689_p5 }
 0x178   : > { %699 = shalt.err (!%p696_p1)
}
 0x179   : > { %513 = dma.vmem_to_hbm [thread:$0]  (%p1075_p10), %s1002_s9, 128, %s1000_s1, %s347_s15  }
 0x17a PF: > { %s372_s7 = sand.u32 1, %s738_s12   ;;  %p1076_p8 = scmp.ne.s32.totalorder %s1065_s27, 0 }
 0x17b   : > { %p1077_p9 = scmp.ge.s32.totalorder %s758_s17, 2  ;;  %s373_s18 = scalar_lea.sflag [#allocation6], %s372_s7 }
 0x17d   : > { %p526_p6 = pnand %p1077_p9, %p1076_p8 }
 0x17f   : > { %733 = dma.done.wait (!%p526_p6), %s373_s18, 128  }
 0x180   : > { %735 = vsyncadd (!%p526_p6), %s373_s18, 4294967168  ;;  %s22_s17 = sadd.s32 1, %s758_s17   ;;  %s1078_s25 = sld [smem:[#allocation16_spill]] }
 0x181   : > { %p19_p13 = scmp.ge.s32.totalorder %s22_s17, 4   ;;  %s1079_s15 = sld [smem:[#allocation14_spill]] }
 0x182   : > { %s1080_s16 = sld [smem:[#allocation15_spill]]  ;;  %s1081_s12 = smov %s742_s13 }
 0x183   : > { %s1082_s13 = smov %s746_s14  ;;  %21 = sbr.rel (!%p19_p13) target bundleno = 10 (0xa), region = 109 }
 0x186   : > { %s1083_s14 = smov %s1078_s25 }
 0x18a   :  { %378 = vsyncpa [#allocation5], 1 }
 0x18b   :  { %380 = vsyncpa [#allocation5 + $0x1], 1 }
 0x18c   :  { %381 = vsyncpa [#allocation8], 1 }
 0x18d   :  { %383 = vsyncpa [#allocation8 + $0x1], 1 }
 0x18e   :  { %384 = vsyncpa [#allocation6], 1 }
 0x18f   :  { %386 = vsyncpa [#allocation6 + $0x1], 1 }

</bundles_post_ra>
